<compile_context>
chip_gen: v6e
topology: v6e:2x2x1
jax: 0.10.0
libtpu: 0.0.40
codegen_flags: <defaults>
</compile_context>

<pallas_src>
import functools

import jax
import jax.numpy as jnp
from jax.experimental import pallas as pl
from jax.experimental.pallas import tpu as pltpu


def _round_up(n, m):
    return ((n + m - 1) // m) * m


def _pick_block_b(B):
    """Pick the batch-tile size.

    B <= 8      : one tile equal to the full batch dim (satisfies the (8,128) rule).
    B  > 8      : multiple of 8, sized for >=4 grid steps (v7x 2-TC sharding of the
                  "parallel" axis) and capped at 2048 rows so the double-buffered
                  bf16/f32 tile footprint stays well under the default scoped-VMEM
                  limit on v5e / v6e / v7x.
    """
    if B <= 8:
        return B
    target = _round_up(pl.cdiv(B, 4), 8)
    return int(max(8, min(2048, target)))


def vae_kernel(x_ref, w1_ref, b1_ref, wh_ref, bh_ref,
               wd1_ref, bd1_ref, wd2_ref, bd2_ref, eps_ref,
               recon_ref, mlz_ref, *, latent):
    f32 = jnp.float32
    # bf16 is storage-only: upcast to f32 for all math (v5e VPU has no bf16; the tiny
    # f32 matmuls are irrelevant to wall-clock in this memory-bound kernel).
    x = x_ref[...].astype(f32)                                          # [TB, D_in]

    # ---- encoder trunk: h = relu(x @ W1 + b1) ----
    h = jnp.dot(x, w1_ref[...].astype(f32), preferred_element_type=f32)
    h = jnp.maximum(h + b1_ref[...].astype(f32), 0.0)

    # ---- fused heads: [mu | log_var] = h @ [Wmu | Wlv] + [bmu | blv] ----
    heads = jnp.dot(h, wh_ref[...].astype(f32), preferred_element_type=f32)
    heads = heads + bh_ref[...].astype(f32)
    mu = heads[:, :latent]
    logvar = heads[:, latent:]

    # ---- reparameterize: z = mu + eps * exp(0.5 * log_var)  (exp -> EUP) ----
    z = mu + eps_ref[...].astype(f32) * jnp.exp(0.5 * logvar)

    # ---- decoder: recon = relu(z @ Wd1 + bd1) @ Wd2 + bd2 ----
    hd = jnp.dot(z, wd1_ref[...].astype(f32), preferred_element_type=f32)
    hd = jnp.maximum(hd + bd1_ref[...].astype(f32), 0.0)
    recon = jnp.dot(hd, wd2_ref[...].astype(f32), preferred_element_type=f32)
    recon = recon + bd2_ref[...].astype(f32)

    recon_ref[...] = recon.astype(recon_ref.dtype)                      # bf16 store
    # `heads` already holds [mu | log_var] contiguously; just append z.
    mlz_ref[...] = jnp.concatenate([heads, z], axis=-1)


def vae_forward(x, params, eps, *, block_b=None):
    """x: [B, S, F] float32, eps: [B, latent] float32.

    Returns (recon [B,S,F] bf16, mu [B,L] f32, log_var [B,L] f32, z [B,L] f32).
    """
    B, S, F = x.shape
    d_in = S * F
    (w1, b1, wmu, bmu, wlv, blv, wd1, bd1, wd2, bd2) = params
    H = w1.shape[1]
    L = wmu.shape[1]
    bf16 = jnp.bfloat16

    # ---- bf16 streaming of everything the kernel reads (halves HBM read bytes) ----
    x_flat = x.reshape(B, d_in).astype(bf16)
    eps_b = eps.astype(bf16)
    w1_b, b1_b = w1.astype(bf16), b1.astype(bf16)
    w_heads = jnp.concatenate([wmu, wlv], axis=1).astype(bf16)          # [H, 2L]
    b_heads = jnp.concatenate([bmu, blv], axis=1).astype(bf16)          # [1, 2L]
    wd1_b, bd1_b = wd1.astype(bf16), bd1.astype(bf16)
    wd2_b, bd2_b = wd2.astype(bf16), bd2.astype(bf16)

    # ---- batch tiling: no explicit padding, rely on Pallas edge-block clipping ----
    # (rows are independent; garbage rows in a ragged last block are discarded)
    if block_b is None:
        block_b = _pick_block_b(B)
    grid = (pl.cdiv(B, block_b),)

    def row_spec(last_dim):
        # per-batch-tile block, pipelined across the grid
        return pl.BlockSpec((block_b, last_dim), lambda i: (i, 0))

    def resident_spec(shape):
        # whole array, constant index_map -> loaded once, stays resident in VMEM.
        # TODO(synk): pipeline_mode=pl.Buffered(1) would halve their VMEM reservation
        #             (~0.1 MB here); skipped to stay on the known-good compile path.
        return pl.BlockSpec(shape, lambda i: (0,) * len(shape))

    inputs = (x_flat, w1_b, b1_b, w_heads, b_heads, wd1_b, bd1_b, wd2_b, bd2_b, eps_b)
    in_specs = [
        row_spec(d_in),                     # x tile
        resident_spec(w1_b.shape), resident_spec(b1_b.shape),
        resident_spec(w_heads.shape), resident_spec(b_heads.shape),
        resident_spec(wd1_b.shape), resident_spec(bd1_b.shape),
        resident_spec(wd2_b.shape), resident_spec(bd2_b.shape),
        row_spec(L),                        # eps tile
    ]

    out_shapes = (
        jax.ShapeDtypeStruct((B, d_in), bf16),           # recon (no lane padding)
        jax.ShapeDtypeStruct((B, 3 * L), jnp.float32),   # packed [mu | log_var | z]
    )
    out_specs = (row_spec(d_in), row_spec(3 * L))

    # ---- advisory cost estimate for the XLA scheduler ----
    weight_elems = (d_in * H + H) + (H * 2 * L + 2 * L) + (L * H + H) + (H * d_in + d_in)
    flops = 2 * B * (d_in * H + H * 2 * L + L * H + H * d_in)
    bytes_accessed = (2 * (B * (d_in + L) + weight_elems)   # bf16 reads
                      + 2 * B * d_in                        # bf16 recon write
                      + 4 * B * 3 * L)                      # f32 mu/log_var/z write
    cost = pl.CostEstimate(flops=int(flops),
                           transcendentals=int(B * L),
                           bytes_accessed=int(bytes_accessed))

    recon_flat, mlz = pl.pallas_call(
        functools.partial(vae_kernel, latent=L),
        grid=grid,
        in_specs=in_specs,
        out_specs=out_specs,
        out_shape=out_shapes,
        compiler_params=pltpu.CompilerParams(
            dimension_semantics=("parallel",)),
        cost_estimate=cost,
    )(*inputs)

    recon = recon_flat.reshape(B, S, F)      # free reshape, no slice-copy
    mu = mlz[:, 0:L]
    log_var = mlz[:, L:2 * L]
    z = mlz[:, 2 * L:3 * L]
    return recon, mu, log_var, z


def init_params(key, d_in, hidden, latent):
    """Deterministic PyTorch-Linear-style init (uniform +-1/sqrt(fan_in)), f32 masters."""
    def linear(key, fan_in, fan_out):
        kw, kb = jax.random.split(key)
        lim = 1.0 / jnp.sqrt(fan_in)
        w = jax.random.uniform(kw, (fan_in, fan_out), jnp.float32, -lim, lim)
        b = jax.random.uniform(kb, (1, fan_out), jnp.float32, -lim, lim)
        return w, b

    keys = jax.random.split(key, 5)
    w1, b1 = linear(keys[0], d_in, hidden)       # encoder trunk
    wmu, bmu = linear(keys[1], hidden, latent)   # mu head
    wlv, blv = linear(keys[2], hidden, latent)   # log_var head
    wd1, bd1 = linear(keys[3], latent, hidden)   # decoder trunk
    wd2, bd2 = linear(keys[4], hidden, d_in)     # decoder output
    return (w1, b1, wmu, bmu, wlv, blv, wd1, bd1, wd2, bd2)


def vae_forward_ref(x, params, eps):
    """Pure-JAX f32 reference for correctness check."""
    B, S, F = x.shape
    (w1, b1, wmu, bmu, wlv, blv, wd1, bd1, wd2, bd2) = params
    xf = x.reshape(B, S * F)
    h = jnp.maximum(xf @ w1 + b1, 0.0)
    mu = h @ wmu + bmu
    lv = h @ wlv + blv
    z = mu + eps * jnp.exp(0.5 * lv)
    hd = jnp.maximum(z @ wd1 + bd1, 0.0)
    rec = (hd @ wd2 + bd2).reshape(B, S, F)
    return rec, mu, lv, z


if __name__ == "__main__":
    B, S, F = 4, 8, 6          # batch, sequence_length, feature_dim (small version of [x,70,6])
    HIDDEN, LATENT = 32, 8

    key = jax.random.PRNGKey(0)
    kx, keps, kp = jax.random.split(key, 3)

    x = jax.random.normal(kx, (B, S, F), dtype=jnp.float32)
    eps = jax.random.normal(keps, (B, LATENT), dtype=jnp.float32)  # torch.randn_like(std)
    params = init_params(kp, S * F, HIDDEN, LATENT)

    recon, mu, log_var, z = vae_forward(x, params, eps)
    jax.block_until_ready((recon, mu, log_var, z))

    # sanity check against pure-JAX f32 reference (bf16 streaming -> looser tolerances)
    r_ref, mu_ref, lv_ref, z_ref = vae_forward_ref(x, params, eps)
    assert jnp.allclose(recon.astype(jnp.float32), r_ref, atol=5e-2, rtol=5e-2)
    assert jnp.allclose(mu, mu_ref, atol=5e-2, rtol=5e-2)
    assert jnp.allclose(log_var, lv_ref, atol=5e-2, rtol=5e-2)
    assert jnp.allclose(z, z_ref, atol=5e-2, rtol=5e-2)

    print("KERNEL_OK")
</pallas_src>

<mosaic_0001>
module attributes {stable_mosaic.version = 11 : i64} {
  func.func @vae_kernel(%arg0: i32, %arg1: memref<4x48xbf16, #tpu.memory_space<vmem>>, %arg2: memref<48x32xbf16, #tpu.memory_space<vmem>>, %arg3: memref<1x32xbf16, #tpu.memory_space<vmem>>, %arg4: memref<32x16xbf16, #tpu.memory_space<vmem>>, %arg5: memref<1x16xbf16, #tpu.memory_space<vmem>>, %arg6: memref<8x32xbf16, #tpu.memory_space<vmem>>, %arg7: memref<1x32xbf16, #tpu.memory_space<vmem>>, %arg8: memref<32x48xbf16, #tpu.memory_space<vmem>>, %arg9: memref<1x48xbf16, #tpu.memory_space<vmem>>, %arg10: memref<4x8xbf16, #tpu.memory_space<vmem>>, %arg11: memref<4x48xbf16, #tpu.memory_space<vmem>>, %arg12: memref<4x24xf32, #tpu.memory_space<vmem>>) attributes {dimension_semantics = [#tpu.dimension_semantics<parallel>], iteration_bounds = array<i64: 1>, scalar_prefetch = 0 : i64, scratch_operands = 0 : i64, tpu.core_type = #tpu.core_type<tc>, window_params = [{transform_indices = @transform_0, window_bounds = array<i64: 4, 48>}, {pipeline_mode = #tpu.pipeline_mode<synchronous>, transform_indices = @transform_1, window_bounds = array<i64: 48, 32>}, {pipeline_mode = #tpu.pipeline_mode<synchronous>, transform_indices = @transform_2, window_bounds = array<i64: 1, 32>}, {pipeline_mode = #tpu.pipeline_mode<synchronous>, transform_indices = @transform_3, window_bounds = array<i64: 32, 16>}, {pipeline_mode = #tpu.pipeline_mode<synchronous>, transform_indices = @transform_4, window_bounds = array<i64: 1, 16>}, {pipeline_mode = #tpu.pipeline_mode<synchronous>, transform_indices = @transform_5, window_bounds = array<i64: 8, 32>}, {pipeline_mode = #tpu.pipeline_mode<synchronous>, transform_indices = @transform_6, window_bounds = array<i64: 1, 32>}, {pipeline_mode = #tpu.pipeline_mode<synchronous>, transform_indices = @transform_7, window_bounds = array<i64: 32, 48>}, {pipeline_mode = #tpu.pipeline_mode<synchronous>, transform_indices = @transform_8, window_bounds = array<i64: 1, 48>}, {transform_indices = @transform_9, window_bounds = array<i64: 4, 8>}, {transform_indices = @transform_10, window_bounds = array<i64: 4, 48>}, {transform_indices = @transform_11, window_bounds = array<i64: 4, 24>}]} {
    %c0 = arith.constant 0 : index
    %c0_0 = arith.constant 0 : index
    %0 = vector.load %arg1[%c0, %c0_0] : memref<4x48xbf16, #tpu.memory_space<vmem>>, vector<4x48xbf16>
    %1 = arith.extf %0 : vector<4x48xbf16> to vector<4x48xf32>
    %c0_1 = arith.constant 0 : index
    %c0_2 = arith.constant 0 : index
    %2 = vector.load %arg2[%c0_1, %c0_2] : memref<48x32xbf16, #tpu.memory_space<vmem>>, vector<48x32xbf16>
    %3 = arith.extf %2 : vector<48x32xbf16> to vector<48x32xf32>
    %cst = arith.constant dense<0.000000e+00> : vector<4x32xf32>
    %4 = tpu.matmul %1, %3, %cst {dimension_numbers = #tpu.dot_dimension_numbers<[1], [0], [0], [1], [0, 0, 1, 1], [], []>} : vector<4x48xf32>, vector<48x32xf32>, vector<4x32xf32> -> vector<4x32xf32>
    %c0_3 = arith.constant 0 : index
    %c0_4 = arith.constant 0 : index
    %5 = vector.load %arg3[%c0_3, %c0_4] : memref<1x32xbf16, #tpu.memory_space<vmem>>, vector<1x32xbf16>
    %6 = arith.extf %5 : vector<1x32xbf16> to vector<1x32xf32>
    %7 = vector.broadcast %6 : vector<1x32xf32> to vector<4x32xf32>
    %8 = arith.addf %4, %7 : vector<4x32xf32>
    %cst_5 = arith.constant 0.000000e+00 : f32
    %9 = vector.broadcast %cst_5 : f32 to vector<4x32xf32>
    %10 = arith.maximumf %8, %9 : vector<4x32xf32>
    %c0_6 = arith.constant 0 : index
    %c0_7 = arith.constant 0 : index
    %11 = vector.load %arg4[%c0_6, %c0_7] : memref<32x16xbf16, #tpu.memory_space<vmem>>, vector<32x16xbf16>
    %12 = arith.extf %11 : vector<32x16xbf16> to vector<32x16xf32>
    %cst_8 = arith.constant dense<0.000000e+00> : vector<4x16xf32>
    %13 = tpu.matmul %10, %12, %cst_8 {dimension_numbers = #tpu.dot_dimension_numbers<[1], [0], [0], [1], [0, 0, 1, 1], [], []>} : vector<4x32xf32>, vector<32x16xf32>, vector<4x16xf32> -> vector<4x16xf32>
    %c0_9 = arith.constant 0 : index
    %c0_10 = arith.constant 0 : index
    %14 = vector.load %arg5[%c0_9, %c0_10] : memref<1x16xbf16, #tpu.memory_space<vmem>>, vector<1x16xbf16>
    %15 = arith.extf %14 : vector<1x16xbf16> to vector<1x16xf32>
    %16 = vector.broadcast %15 : vector<1x16xf32> to vector<4x16xf32>
    %17 = arith.addf %13, %16 : vector<4x16xf32>
    %18 = vector.extract_strided_slice %17 {offsets = [0, 0], sizes = [4, 8], strides = [1, 1]} : vector<4x16xf32> to vector<4x8xf32>
    %19 = vector.extract_strided_slice %17 {offsets = [0, 8], sizes = [4, 8], strides = [1, 1]} : vector<4x16xf32> to vector<4x8xf32>
    %c0_11 = arith.constant 0 : index
    %c0_12 = arith.constant 0 : index
    %20 = vector.load %arg10[%c0_11, %c0_12] : memref<4x8xbf16, #tpu.memory_space<vmem>>, vector<4x8xbf16>
    %21 = arith.extf %20 : vector<4x8xbf16> to vector<4x8xf32>
    %cst_13 = arith.constant 5.000000e-01 : f32
    %22 = vector.broadcast %cst_13 : f32 to vector<4x8xf32>
    %23 = arith.mulf %22, %19 : vector<4x8xf32>
    %24 = math.exp %23 : vector<4x8xf32>
    %25 = arith.mulf %21, %24 : vector<4x8xf32>
    %26 = arith.addf %18, %25 : vector<4x8xf32>
    %c0_14 = arith.constant 0 : index
    %c0_15 = arith.constant 0 : index
    %27 = vector.load %arg6[%c0_14, %c0_15] : memref<8x32xbf16, #tpu.memory_space<vmem>>, vector<8x32xbf16>
    %28 = arith.extf %27 : vector<8x32xbf16> to vector<8x32xf32>
    %cst_16 = arith.constant dense<0.000000e+00> : vector<4x32xf32>
    %29 = tpu.matmul %26, %28, %cst_16 {dimension_numbers = #tpu.dot_dimension_numbers<[1], [0], [0], [1], [0, 0, 1, 1], [], []>} : vector<4x8xf32>, vector<8x32xf32>, vector<4x32xf32> -> vector<4x32xf32>
    %c0_17 = arith.constant 0 : index
    %c0_18 = arith.constant 0 : index
    %30 = vector.load %arg7[%c0_17, %c0_18] : memref<1x32xbf16, #tpu.memory_space<vmem>>, vector<1x32xbf16>
    %31 = arith.extf %30 : vector<1x32xbf16> to vector<1x32xf32>
    %32 = vector.broadcast %31 : vector<1x32xf32> to vector<4x32xf32>
    %33 = arith.addf %29, %32 : vector<4x32xf32>
    %cst_19 = arith.constant 0.000000e+00 : f32
    %34 = vector.broadcast %cst_19 : f32 to vector<4x32xf32>
    %35 = arith.maximumf %33, %34 : vector<4x32xf32>
    %c0_20 = arith.constant 0 : index
    %c0_21 = arith.constant 0 : index
    %36 = vector.load %arg8[%c0_20, %c0_21] : memref<32x48xbf16, #tpu.memory_space<vmem>>, vector<32x48xbf16>
    %37 = arith.extf %36 : vector<32x48xbf16> to vector<32x48xf32>
    %cst_22 = arith.constant dense<0.000000e+00> : vector<4x48xf32>
    %38 = tpu.matmul %35, %37, %cst_22 {dimension_numbers = #tpu.dot_dimension_numbers<[1], [0], [0], [1], [0, 0, 1, 1], [], []>} : vector<4x32xf32>, vector<32x48xf32>, vector<4x48xf32> -> vector<4x48xf32>
    %c0_23 = arith.constant 0 : index
    %c0_24 = arith.constant 0 : index
    %39 = vector.load %arg9[%c0_23, %c0_24] : memref<1x48xbf16, #tpu.memory_space<vmem>>, vector<1x48xbf16>
    %40 = arith.extf %39 : vector<1x48xbf16> to vector<1x48xf32>
    %41 = vector.broadcast %40 : vector<1x48xf32> to vector<4x48xf32>
    %42 = arith.addf %38, %41 : vector<4x48xf32>
    %43 = arith.truncf %42 : vector<4x48xf32> to vector<4x48xbf16>
    %c0_25 = arith.constant 0 : index
    %c0_26 = arith.constant 0 : index
    %44 = vector.load %arg11[%c0_25, %c0_26] : memref<4x48xbf16, #tpu.memory_space<vmem>>, vector<4x48xbf16>
    tpu.vector_store %arg11[%c0_25, %c0_26], %43 {strides = array<i32>} : memref<4x48xbf16, #tpu.memory_space<vmem>>, vector<4x48xbf16>,
    %45 = tpu.concatenate %17, %26 in 1 : vector<4x16xf32>, vector<4x8xf32> -> vector<4x24xf32>
    %c0_27 = arith.constant 0 : index
    %c0_28 = arith.constant 0 : index
    %46 = vector.load %arg12[%c0_27, %c0_28] : memref<4x24xf32, #tpu.memory_space<vmem>>, vector<4x24xf32>
    tpu.vector_store %arg12[%c0_27, %c0_28], %45 {strides = array<i32>} : memref<4x24xf32, #tpu.memory_space<vmem>>, vector<4x24xf32>,
    return
  }
  func.func @transform_0(%arg0: i32) -> (i32, i32) {
    %c0_i32 = arith.constant 0 : i32
    %c0_i32_0 = arith.constant 0 : i32
    return %arg0, %c0_i32 : i32, i32
  }
  func.func @transform_1(%arg0: i32) -> (i32, i32) {
    %c0_i32 = arith.constant 0 : i32
    %c0_i32_0 = arith.constant 0 : i32
    %c0_i32_1 = arith.constant 0 : i32
    return %c0_i32, %c0_i32_0 : i32, i32
  }
  func.func @transform_2(%arg0: i32) -> (i32, i32) {
    %c0_i32 = arith.constant 0 : i32
    %c0_i32_0 = arith.constant 0 : i32
    %c0_i32_1 = arith.constant 0 : i32
    return %c0_i32, %c0_i32_0 : i32, i32
  }
  func.func @transform_3(%arg0: i32) -> (i32, i32) {
    %c0_i32 = arith.constant 0 : i32
    %c0_i32_0 = arith.constant 0 : i32
    %c0_i32_1 = arith.constant 0 : i32
    return %c0_i32, %c0_i32_0 : i32, i32
  }
  func.func @transform_4(%arg0: i32) -> (i32, i32) {
    %c0_i32 = arith.constant 0 : i32
    %c0_i32_0 = arith.constant 0 : i32
    %c0_i32_1 = arith.constant 0 : i32
    return %c0_i32, %c0_i32_0 : i32, i32
  }
  func.func @transform_5(%arg0: i32) -> (i32, i32) {
    %c0_i32 = arith.constant 0 : i32
    %c0_i32_0 = arith.constant 0 : i32
    %c0_i32_1 = arith.constant 0 : i32
    return %c0_i32, %c0_i32_0 : i32, i32
  }
  func.func @transform_6(%arg0: i32) -> (i32, i32) {
    %c0_i32 = arith.constant 0 : i32
    %c0_i32_0 = arith.constant 0 : i32
    %c0_i32_1 = arith.constant 0 : i32
    return %c0_i32, %c0_i32_0 : i32, i32
  }
  func.func @transform_7(%arg0: i32) -> (i32, i32) {
    %c0_i32 = arith.constant 0 : i32
    %c0_i32_0 = arith.constant 0 : i32
    %c0_i32_1 = arith.constant 0 : i32
    return %c0_i32, %c0_i32_0 : i32, i32
  }
  func.func @transform_8(%arg0: i32) -> (i32, i32) {
    %c0_i32 = arith.constant 0 : i32
    %c0_i32_0 = arith.constant 0 : i32
    %c0_i32_1 = arith.constant 0 : i32
    return %c0_i32, %c0_i32_0 : i32, i32
  }
  func.func @transform_9(%arg0: i32) -> (i32, i32) {
    %c0_i32 = arith.constant 0 : i32
    %c0_i32_0 = arith.constant 0 : i32
    return %arg0, %c0_i32 : i32, i32
  }
  func.func @transform_10(%arg0: i32) -> (i32, i32) {
    %c0_i32 = arith.constant 0 : i32
    %c0_i32_0 = arith.constant 0 : i32
    return %arg0, %c0_i32 : i32, i32
  }
  func.func @transform_11(%arg0: i32) -> (i32, i32) {
    %c0_i32 = arith.constant 0 : i32
    %c0_i32_0 = arith.constant 0 : i32
    return %arg0, %c0_i32 : i32, i32
  }
}

</mosaic_0001>

<bundles_post_ra>
// kernel: tpu_custom_call.1
= control target key start
LH: loop header
LB: loop body
LE: loop exit
PB: predicated region body
PF: predicated region fallthrough
CT: control target
= control target key end

     0   :  { %17 = vsyncpa [#allocation3], 0  ;;  %v590_v2 = vmov 0.0   ;;  %vm591_vm0 = vmmov 0   ;;  %s735_s0 = inlined_call_operand.vmem [shape: bf16[4,48], index: 0, kind: input, shape index: {}]   ;;  %s736_s1 = inlined_call_operand.vmem [shape: bf16[48,32], index: 1, kind: input, shape index: {}]   ;;  %s737_s2 = inlined_call_operand.vmem [shape: bf16[1,32], index: 2, kind: input, shape index: {}]   ;;  %s738_s3 = inlined_call_operand.vmem [shape: bf16[32,16], index: 3, kind: input, shape index: {}]   ;;  %s739_s4 = inlined_call_operand.vmem [shape: bf16[1,16], index: 4, kind: input, shape index: {}]   ;;  %s740_s5 = inlined_call_operand.vmem [shape: bf16[8,32], index: 5, kind: input, shape index: {}]   ;;  %s741_s6 = inlined_call_operand.vmem [shape: bf16[1,32], index: 6, kind: input, shape index: {}]   ;;  %s742_s7 = inlined_call_operand.vmem [shape: bf16[32,48], index: 7, kind: input, shape index: {}]   ;;  %s743_s8 = inlined_call_operand.vmem [shape: bf16[1,48], index: 8, kind: input, shape index: {}]   ;;  %s744_s9 = inlined_call_operand.vmem [shape: bf16[4,8], index: 9, kind: input, shape index: {}]   ;;  %s745_s10 = inlined_call_operand.hbm [shape: bf16[4,48], index: 10, kind: output, shape index: {0}]   ;;  %s746_s11 = inlined_call_operand.hbm [shape: f32[4,24], index: 11, kind: output, shape index: {1}]  }
   0x1   :  { %v474_v0 = vld [vmem:[%s736_s1 + $0x10] sm:$0xff]   ;;  %v473_v1 = vld [vmem:[%s736_s1 + $0x8] sm:$0xff]   ;;  %496 = vmatprep.subr.mxu0 %v590_v2  ;;  %508 = vmatprep.mubr.msk.f32.mxu0 %vm591_vm0, %v590_v2 }
   0x2   :  { %v455_v3 = vunpack.c.l.bf16 %v474_v0  ;;  %v456_v4 = vunpack.c.h.bf16 %v474_v0  ;;  %v475_v5 = vld [vmem:[%s738_s3 + $0x8] sm:$0xff]   ;;  %511 = vmatprep.subr.mxu1 %v590_v2  ;;  %519 = vmatprep.mubr.msk.f32.mxu1 %vm591_vm0, %v590_v2 }
   0x3   :  { %18 = vsyncpa [#allocation5], 0  ;;  %v452_v6 = vunpack.c.h.bf16 %v473_v1  ;;  %v463_v7 = vunpack.c.l.bf16 %v475_v5  ;;  %v464_v8 = vunpack.c.h.bf16 %v475_v5  ;;  %v446_v9 = vld [vmem:[%s736_s1] sm:$0xff]   ;;  %v451_v10 = vunpack.c.l.bf16 %v473_v1  ;;  %s592_s12 = smov 120   ;;  %v476_v39 = vld [vmem:[%s742_s7 + $0x8] sm:$0xff]  }
   0x4   :  { %497 = vmatpush3.msra.mxu0 %v456_v4  ;;  %v448_v11 = vunpack.c.h.bf16 %v446_v9  ;;  %v39_v12 = vld [vmem:[%s735_s0] sm:$0x3]  ;;  %v447_v13 = vunpack.c.l.bf16 %v446_v9  ;;  %vm59_vm1 = vcmask 392192   ;;  %v55_v18 = vlaneseq }
   0x5   :  { %498 = vmatprep.subr.mxu0 %v590_v2  ;;  %512 = vmatpush3.msra.mxu1 %v464_v8  ;;  %v40_v14 = vunpack.c.l.bf16 %v39_v12  ;;  %v458_v15 = vld [vmem:[%s738_s3] sm:$0xff]   ;;  %vm148_vm2 = vcmask 261120   ;;  %v472_v40 = vunpack.c.h.bf16 %v476_v39  ;;  %vm241_vm3 = vcmask 64512  }
   0x6   :  { %499 = vmatpush3.msra.mxu0 %v455_v3  ;;  %513 = vmatprep.subr.mxu1 %v590_v2  ;;  %v460_v16 = vunpack.c.h.bf16 %v458_v15  ;;  %v459_v17 = vunpack.c.l.bf16 %v458_v15  ;;  %v56_v19 = vshrl.u32 %v55_v18, 7  ;;  %v53_v20 = vld [vmem:[%s737_s2] sm:$0x1]  ;;  %v471_v46 = vunpack.c.l.bf16 %v476_v39 }
   0x7   :  { %500 = vmatprep.subr.mxu0 %v590_v2  ;;  %514 = vmatpush3.msra.mxu1 %v463_v7  ;;  %v54_v21 = vunpack.c.l.bf16 %v53_v20  ;;  %v142_v28 = vld [vmem:[%s739_s4] sm:$0x1]  ;;  %vm409_vm4 = vcmask 130048   ;;  %vm411_vm5 = vcmask 191488  }
   0x8   :  { %501 = vmatpush3.msra.mxu0 %v452_v6  ;;  %515 = vmatprep.subr.mxu1 %v590_v2  ;;  %v695_v22 = vsub.s32 0, %v56_v19  ;;  %v143_v29 = vunpack.c.l.bf16 %v142_v28  ;;  %v233_v36 = vld [vmem:[%s740_s5] sm:$0xf]  ;;  %s593_s5 = smov 16  }
   0x9   :  { %502 = vmatprep.subr.mxu0 %v590_v2  ;;  %516 = vmatpush3.msra.mxu1 %v460_v16  ;;  %v234_v37 = vunpack.c.l.bf16 %v233_v36  ;;  %v222_v41 = vld [vmem:[%s744_s9] sm:$0x3] }
   0xa   :  { %503 = vmatpush3.msra.mxu0 %v451_v10  ;;  %517 = vmatprep.subr.mxu1 %v590_v2  ;;  %v58_v23 = vrot.slane %v54_v21, %v695_v22  ;;  %v147_v30 = vrot.slane %v143_v29, %v695_v22  ;;  %v223_v42 = vunpack.c.l.bf16 %v222_v41  ;;  %v466_v47 = vld [vmem:[%s742_s7] sm:$0xff]   ;;  %s594_s7 = smov [#allocation4]  }
   0xb   :  { %504 = vmatprep.subr.mxu0 %v590_v2  ;;  %518 = vmatpush3.msra.mxu1 %v459_v17  ;;  %v468_v48 = vunpack.c.h.bf16 %v466_v47  ;;  %v467_v49 = vunpack.c.l.bf16 %v466_v47  ;;  %v235_v52 = vld [vmem:[%s741_s6] sm:$0x1]  ;;  %s429_s19 = sshll.u32 %s594_s7, 4  ;;  %s430_s19 = int_to_ptr.vmem [resolvable:$true] %s429_s19 }
   0xc   :  { %505 = vmatpush3.msra.mxu0 %v448_v11  ;;  %522 = vmatprep.subr.mxu1 %v590_v2  ;;  %v236_v53 = vunpack.c.l.bf16 %v235_v52  ;;  %s546_s20 = scalar_lea.vmem %s430_s19, 64  ;;  %p551_p1 = scmp.lt.s32.totalorder %s430_s19, %s430_s19 }
   0xd   :  { %506 = vmatprep.subr.mxu0 %v590_v2  ;;  %p547_p0 = scmp.ne.s32.totalorder %s430_s19, %s546_s20  ;;  %p552_p2 = scmp.lt.s32.totalorder %s546_s20, %s546_s20 }
   0xe   :  { %507 = vmatpush3.msra.mxu0 %v447_v13  ;;  %v240_v54 = vrot.slane %v236_v53, %v695_v22 }
   0xf   :  { %509 = vmatmul.mubr.msk.f32.vlgmr.msra.gmra.mxu0 %vm59_vm1, %v40_v14  ;;  %527 = vmatprep.subr.mxu0 %v590_v2  ;;  %p553_p3 = por %p552_p2, %p551_p1 }
  0x10   :  { %535 = vmatprep.mubr.msk.f32.mxu0 %vm591_vm0, %v590_v2  ;;  %528 = vmatpush3.msra.mxu0 %v472_v40 }
  0x11   :  { %529 = vmatprep.subr.mxu0 %v590_v2  ;;  %p554_p4 = pnand %p553_p3, %p547_p0 }
  0x12   :  { %530 = vmatpush3.msra.mxu0 %v471_v46 }
  0x13   :  { %531 = vmatprep.subr.mxu0 %v590_v2 }
  0x14   :  { %532 = vmatpush3.msra.mxu0 %v468_v48 }
  0x15   :  { %533 = vmatprep.subr.mxu0 %v590_v2 }
  0x16   :  { %534 = vmatpush3.msra.mxu0 %v467_v49 }
  0xcf   :  { %v129_v24 = vpop.f32.mrf.mxu0 }
  0xd0   :  { %v130_v25 = vadd.f32 %v129_v24, %v58_v23 }
  0xd1   :  { %v510_v26 = vpop.f32.mrf.mxu0 }
  0xd2   :  { %v133_v27 = vmax.f32 %v130_v25, 0.0 }
  0xd4   :  { %520 = vmatmul.mubr.msk.f32.vlgmr.msra.gmra.mxu1 %vm148_vm2, %v133_v27 }
  0xd5   :  { %524 = vmatprep.mubr.msk.f32.mxu1 %vm591_vm0, %v590_v2  ;;  %523 = vmatpush3.msra.mxu1 %v234_v37 }
 0x194   :  { %v218_v31 = vpop.f32.mrf.mxu1 }
 0x195   :  { %v219_v32 = vadd.f32 %v218_v31, %v147_v30 }
 0x196   :  { %v521_v33 = vpop.f32.mrf.mxu1 }
 0x197   :  { %v224_v34 = vmul.f32 0.5, %v219_v32 }
 0x199   :  { %v225_v35 = vmul.f32 1.442695, %v224_v34 }
 0x19b   :  { %544 = vpow2.f32 %v225_v35 }
 0x1a8   :  { %v545_v38 = vpop.eup %544 }
 0x1a9   :  { %228 = vrot.lane.b32.xlu0 %v545_v38, %s592_s12 }
 0x21b   :  { %v229_v43 = vpop.permute.xlu0 %228 }
 0x21c   :  { %v231_v44 = vmul.f32 %v229_v43, %v223_v42 }
 0x21e   :  { %v232_v45 = vadd.f32 %v231_v44, %v219_v32 }
 0x220   :  { %406 = vrot.lane.b32.xlu0 %v232_v45, %s593_s5  ;;  %525 = vmatmul.mubr.msk.f32.vlgmr.msra.gmra.mxu1 %vm241_vm3, %v232_v45 }
 0x292   :  { %v407_v50 = vpop.permute.xlu0 %406 }
 0x293   :  { %v410_v51 = vsel %vm409_vm4, %v219_v32, %v407_v50 }
 0x294   :  { %412 = vst.msk [vmem:[#allocation4] sm:$0xf] %vm411_vm5, %v410_v51 }
 0x2e0   :  { %v311_v55 = vpop.f32.mrf.mxu1 }
 0x2e1   :  { %v312_v56 = vadd.f32 %v311_v55, %v240_v54 }
 0x2e2   :  { %v526_v57 = vpop.f32.mrf.mxu1 }
 0x2e3   :  { %v315_v58 = vmax.f32 %v312_v56, 0.0 }
 0x2e5   :  { %536 = vmatmul.mubr.msk.f32.vlgmr.msra.gmra.mxu0 %vm148_vm2, %v315_v58 }
 0x2e6   :  { %557 = shalt.err (!%p554_p4)
}
 0x2e7   :  { %432 = dma.vmem_to_hbm [thread:$0]  %s430_s19, 64, %s746_s11, [#allocation5]   ;;  %v324_v59 = vld [vmem:[%s743_s8] sm:$0x1]  ;;  %vm404_vm6 = vcmask 386048  }
 0x2e8   :  { %v325_v60 = vunpack.c.l.bf16 %v324_v59  ;;  %s595_s24 = smov [#allocation2]  }
 0x2e9   :  { %s419_s25 = sshll.u32 %s595_s24, 4  ;;  %s420_s25 = int_to_ptr.vmem [resolvable:$true] %s419_s25 }
 0x2ea   :  { %v329_v61 = vrot.slane %v325_v60, %v695_v22  ;;  %s566_s26 = scalar_lea.vmem %s420_s25, 32  ;;  %p571_p6 = scmp.lt.s32.totalorder %s420_s25, %s420_s25 }
 0x2eb   :  { %p567_p5 = scmp.ne.s32.totalorder %s420_s25, %s566_s26  ;;  %p572_p7 = scmp.lt.s32.totalorder %s566_s26, %s566_s26 }
 0x2ed   :  { %p573_p8 = por %p572_p7, %p571_p6 }
 0x2ef   :  { %p574_p9 = pnand %p573_p8, %p567_p5 }
 0x3a5   :  { %v399_v62 = vpop.f32.mrf.mxu0 }
 0x3a6   :  { %v400_v63 = vadd.f32 %v399_v62, %v329_v61 }
 0x3a7   :  { %v537_v0 = vpop.f32.mrf.mxu0 }
 0x3a8   :  { %v403_v1 = vpack.c.bf16 %v400_v63, %v400_v63 }
 0x3aa   :  { %405 = vst.msk [vmem:[#allocation2] sm:$0x3] %vm404_vm6, %v403_v1 }
 0x3ab   :  { %577 = shalt.err (!%p574_p9)
}
 0x3ac   :  { %422 = dma.vmem_to_hbm [thread:$0]  %s420_s25, 32, %s745_s10, [#allocation3]  }
 0x3ad   :  { %586 = dma.done.wait [#allocation3], 32  }
 0x3ae   :  { %587 = vsyncadd [#allocation3], 4294967264 }
 0x3af   :  { %588 = dma.done.wait [#allocation5], 64  }
 0x3b0   :  { %589 = vsyncadd [#allocation5], 4294967232 }
 0x3b1   :  { %439 = vsyncpa [#allocation3], 1 }
 0x3b2   :  { %440 = vsyncpa [#allocation5], 1 }

</bundles_post_ra>
